<compile_context>
chip_gen: v6e
topology: v6e:2x2x1
jax: 0.10.0
libtpu: 0.0.40
codegen_flags: <defaults>
</compile_context>

<pallas_src>
import math
from typing import NamedTuple

import jax
import jax.numpy as jnp
import numpy as np
from jax.experimental import pallas as pl
from jax.experimental.pallas import tpu as pltpu

_LANE = 128
_MIB = 1024 * 1024


def _round_up(n, m):
    return ((n + m - 1) // m) * m


def _tpu_config():
    """Return (vmem_limit_bytes, vmem_budget_bytes, min_grid_steps) for the local TPU generation."""
    vmem_cap = None
    try:
        info = pltpu.get_tpu_info()
        vmem_cap = getattr(info, "vmem_capacity_bytes", None)
    except Exception:
        vmem_cap = None
    if vmem_cap is None:
        vmem_cap = 64 * _MIB  # conservative: assume v7x-sized VMEM

    if vmem_cap >= 96 * _MIB:          # v5e / v6e: 128 MiB physical VMEM
        vmem_limit = 100 * _MIB
        vmem_budget = 80 * _MIB
    else:                              # v7x: 64 MiB physical VMEM
        vmem_limit = 48 * _MIB
        vmem_budget = 40 * _MIB

    # v7x has 2 TensorCores sharing the "parallel" batch axis -> want >= 2 steps per core so
    # each core's x-tile DMA overlaps compute.  v5e/v6e are single-TC: take the biggest tile.
    num_tc = 1
    try:
        if "v7" in jax.devices()[0].device_kind.lower():
            num_tc = 2
    except Exception:
        pass
    min_steps = 4 if num_tc == 2 else 1
    return vmem_limit, vmem_budget, min_steps


# ---------------------------------------------------------------------------
# Kernel
# ---------------------------------------------------------------------------
def classblock_kernel(x_ref, w1_ref, b1_ref, w2_ref, b2_ref, o_ref):
    """Fused ClassBlock forward for one batch tile.

    x_ref:  (TB, Dp)   bf16 input activations (batch tile)
    w1_ref: (Dp, Np)   bf16 add_block Linear weight, BN(eval) pre-folded, transposed
    b1_ref: (1, Np)    f32  folded bias (Linear bias + BN running stats + beta)
    w2_ref: (Np, Cp)   bf16 classifier Linear weight, transposed
    b2_ref: (1, Cp)    f32  classifier Linear bias
    o_ref:  (TB, Cp)   f32  logits
    """
    # Linear (+ folded BatchNorm): bf16 x bf16 -> f32 accumulation on the MXU.
    h = jnp.dot(x_ref[...], w1_ref[...], preferred_element_type=jnp.float32)
    h = h + b1_ref[...]

    # LeakyReLU(negative_slope=0.1): max(h, 0.1*h) == h for h>=0, 0.1*h for h<0.
    h = jnp.maximum(h, 0.1 * h)

    # Dropout(p=0.5): identity in eval mode.

    # classifier Linear (bf16 operands, f32 accumulation). Output kept f32 for accuracy.
    logits = jnp.dot(h.astype(jnp.bfloat16), w2_ref[...],
                     preferred_element_type=jnp.float32)
    logits = logits + b2_ref[...]
    o_ref[...] = logits.astype(o_ref.dtype)


# ---------------------------------------------------------------------------
# Parameter handling
# ---------------------------------------------------------------------------
class PreparedParams(NamedTuple):
    w1: jax.Array        # (Dp, Np) bf16, BN folded, transposed
    b1: jax.Array        # (1, Np)  f32
    w2: jax.Array        # (Np, Cp) bf16, transposed
    b2: jax.Array        # (1, Cp)  f32
    input_dim: int       # original D_in
    class_num: int       # original C


def init_class_block_params(key, input_dim, class_num, num_bottleneck):
    """Raw PyTorch-layout params mirroring weights_init_kaiming / weights_init_classifier."""
    k1, k2, k3 = jax.random.split(key, 3)

    # add_block Linear: kaiming_normal, a=0, mode='fan_out' => std = sqrt(2 / num_bottleneck)
    std1 = math.sqrt(2.0 / num_bottleneck)
    w1 = jax.random.normal(k1, (num_bottleneck, input_dim), jnp.float32) * std1
    b1 = jnp.zeros((num_bottleneck,), jnp.float32)

    # BatchNorm1d: weight ~ N(1.0, 0.02), bias = 0, fresh running stats
    gamma = 1.0 + 0.02 * jax.random.normal(k2, (num_bottleneck,), jnp.float32)
    beta = jnp.zeros((num_bottleneck,), jnp.float32)
    running_mean = jnp.zeros((num_bottleneck,), jnp.float32)
    running_var = jnp.ones((num_bottleneck,), jnp.float32)

    # classifier Linear: weight ~ N(0, 0.001), bias = 0
    w2 = 0.001 * jax.random.normal(k3, (class_num, num_bottleneck), jnp.float32)
    b2 = jnp.zeros((class_num,), jnp.float32)
    return (w1, b1, gamma, beta, running_mean, running_var, w2, b2)


def prepare_params(raw_params, eps=1e-5):
    """Fold BN (running stats + affine) into Linear1, pad to lane-aligned shapes, cast to bf16."""
    w1_pt, b1, gamma, beta, r_mean, r_var, w2_pt, b2 = raw_params
    nb, d_in = w1_pt.shape
    c = w2_pt.shape[0]

    scale = gamma * jax.lax.rsqrt(r_var + eps)              # (NB,)
    w1f = (w1_pt * scale[:, None]).T                        # (D_in, NB), BN folded
    b1f = (b1 - r_mean) * scale + beta                      # (NB,)
    w2f = w2_pt.T                                           # (NB, C)

    dp = _round_up(d_in, _LANE)
    np_ = _round_up(nb, _LANE)
    cp = _round_up(c, _LANE)

    w1p = jnp.zeros((dp, np_), jnp.bfloat16).at[:d_in, :nb].set(w1f.astype(jnp.bfloat16))
    b1p = jnp.zeros((1, np_), jnp.float32).at[0, :nb].set(b1f)
    w2p = jnp.zeros((np_, cp), jnp.bfloat16).at[:nb, :c].set(w2f.astype(jnp.bfloat16))
    b2p = jnp.zeros((1, cp), jnp.float32).at[0, :c].set(b2)
    return PreparedParams(w1p, b1p, w2p, b2p, d_in, c)


# ---------------------------------------------------------------------------
# Wrapper
# ---------------------------------------------------------------------------
def class_block_forward(x, params: PreparedParams, *, tile_b=None):
    B, d_in = x.shape
    assert d_in == params.input_dim
    dp, np_ = params.w1.shape
    cp = params.w2.shape[1]

    vmem_limit, vmem_budget, min_steps = _tpu_config()

    # --- batch tile selection -------------------------------------------------
    # No artificial 256-row cap; only the VMEM budget (and the per-generation min-step rule)
    # bound the tile.  bf16 packs [16,128] per vreg -> rows in multiples of 16, floor 16.
    if tile_b is None:
        tile_b = pl.cdiv(B, min_steps)
    tile_b = max(16, _round_up(tile_b, 16))

    # Per-step VMEM working set: x/out tiles are double-buffered by the pipeline; the
    # grid-constant weights/biases are single-buffered (pl.Buffered(1)).
    def vmem_est(tb):
        return (2 * tb * dp * 2      # x tile, bf16, double-buffered
                + dp * np_ * 2       # w1, bf16, single-buffered
                + np_ * 4            # b1, f32
                + np_ * cp * 2       # w2, bf16
                + cp * 4             # b2, f32
                + 2 * tb * cp * 4    # out tile, f32, double-buffered
                + tb * np_ * 4)      # h intermediate, f32

    while tile_b > 16 and vmem_est(tile_b) > vmem_budget:
        tile_b = max(16, _round_up(tile_b // 2, 16))
    if vmem_est(16) > vmem_budget:
        # TODO(synk): K-tile over Dp (grid axis + f32 accumulator with pl.when init/finalize) so
        # very large D_in x NB still fits VMEM (matters most on v7x); fail loudly until then.
        raise ValueError(
            "ClassBlock weights exceed the VMEM budget even at the minimum batch tile; "
            "K-tiling over D_in is not implemented.")

    b_pad = _round_up(B, tile_b)

    # Skip the wrapper-side pad copy (a full extra HBM pass over x) when no padding is needed.
    if b_pad == B and dp == d_in:
        x_pad = x.astype(jnp.bfloat16)
    else:
        x_pad = jnp.zeros((b_pad, dp), jnp.bfloat16).at[:B, :d_in].set(x.astype(jnp.bfloat16))

    flops = 2 * b_pad * (dp * np_ + np_ * cp)
    bytes_accessed = (b_pad * dp * 2 + dp * np_ * 2 + np_ * cp * 2
                      + np_ * 4 + cp * 4 + b_pad * cp * 4)

    def build_call(single_buffer_consts):
        const_kw = dict(pipeline_mode=pl.Buffered(1)) if single_buffer_consts else {}
        return pl.pallas_call(
            classblock_kernel,
            out_shape=jax.ShapeDtypeStruct((b_pad, cp), jnp.float32),
            grid_spec=pltpu.PrefetchScalarGridSpec(
                num_scalar_prefetch=0,
                grid=(b_pad // tile_b,),
                in_specs=[
                    pl.BlockSpec((tile_b, dp), lambda i: (i, 0)),              # x (batch tiled)
                    # Grid-constant weights/biases: index_map always (0,0).
                    pl.BlockSpec((dp, np_), lambda i: (0, 0), **const_kw),     # w1 (BN folded)
                    pl.BlockSpec((1, np_),  lambda i: (0, 0), **const_kw),     # b1 (folded bias)
                    pl.BlockSpec((np_, cp), lambda i: (0, 0), **const_kw),     # w2
                    pl.BlockSpec((1, cp),   lambda i: (0, 0), **const_kw),     # b2
                ],
                out_specs=pl.BlockSpec((tile_b, cp), lambda i: (i, 0)),
            ),
            compiler_params=pltpu.CompilerParams(
                dimension_semantics=("parallel",),
                vmem_limit_bytes=vmem_limit,
            ),
            cost_estimate=pl.CostEstimate(
                flops=flops, transcendentals=0, bytes_accessed=bytes_accessed),
        )

    args = (x_pad, params.w1, params.b1, params.w2, params.b2)
    try:
        out = build_call(True)(*args)
    except Exception:
        # Fallback: some jax versions reject pipeline_mode/Buffered(1); default double-buffering.
        out = build_call(False)(*args)

    # Strip batch / class padding only when padding was actually added (avoids a slice copy).
    if b_pad == B and cp == params.class_num:
        return out
    return out[:B, :params.class_num]


# ---------------------------------------------------------------------------
# Pure-JAX reference (mirrors the kernel's bf16 operand casts)
# ---------------------------------------------------------------------------
def class_block_reference(x, raw_params, eps=1e-5):
    w1_pt, b1, gamma, beta, r_mean, r_var, w2_pt, b2 = raw_params
    scale = gamma * jax.lax.rsqrt(r_var + eps)
    w1f = ((w1_pt * scale[:, None]).T).astype(jnp.bfloat16)
    b1f = (b1 - r_mean) * scale + beta
    h = jnp.dot(x.astype(jnp.bfloat16), w1f, preferred_element_type=jnp.float32) + b1f
    h = jnp.maximum(h, 0.1 * h)
    return jnp.dot(h.astype(jnp.bfloat16), w2_pt.T.astype(jnp.bfloat16),
                   preferred_element_type=jnp.float32) + b2


if __name__ == "__main__":
    # Small shapes consistent with ClassBlock(input_dim, class_num, num_bottleneck)
    B = 8
    INPUT_DIM = 32
    NUM_BOTTLENECK = 64
    CLASS_NUM = 16

    key = jax.random.PRNGKey(0)
    kx, kp = jax.random.split(key)

    x = jax.random.normal(kx, (B, INPUT_DIM), jnp.float32)
    raw_params = init_class_block_params(kp, INPUT_DIM, CLASS_NUM, NUM_BOTTLENECK)
    prepared = prepare_params(raw_params)

    out = jax.block_until_ready(class_block_forward(x, prepared))
    ref = jax.block_until_ready(class_block_reference(x, raw_params))

    assert out.shape == (B, CLASS_NUM)
    np.testing.assert_allclose(np.asarray(out), np.asarray(ref), rtol=1e-2, atol=1e-4)

    print("KERNEL_OK")
</pallas_src>

<mosaic_0001>
module attributes {stable_mosaic.version = 11 : i64} {
  func.func @classblock_kernel(%arg0: i32, %arg1: memref<16x128xbf16, #tpu.memory_space<vmem>>, %arg2: memref<128x128xbf16, #tpu.memory_space<vmem>>, %arg3: memref<1x128xf32, #tpu.memory_space<vmem>>, %arg4: memref<128x128xbf16, #tpu.memory_space<vmem>>, %arg5: memref<1x128xf32, #tpu.memory_space<vmem>>, %arg6: memref<16x128xf32, #tpu.memory_space<vmem>>) attributes {dimension_semantics = [#tpu.dimension_semantics<parallel>], iteration_bounds = array<i64: 1>, scalar_prefetch = 0 : i64, scratch_operands = 0 : i64, tpu.core_type = #tpu.core_type<tc>, window_params = [{transform_indices = @transform_0, window_bounds = array<i64: 16, 128>}, {pipeline_mode = #tpu.pipeline_mode<synchronous>, transform_indices = @transform_1, window_bounds = array<i64: 128, 128>}, {pipeline_mode = #tpu.pipeline_mode<synchronous>, transform_indices = @transform_2, window_bounds = array<i64: 1, 128>}, {pipeline_mode = #tpu.pipeline_mode<synchronous>, transform_indices = @transform_3, window_bounds = array<i64: 128, 128>}, {pipeline_mode = #tpu.pipeline_mode<synchronous>, transform_indices = @transform_4, window_bounds = array<i64: 1, 128>}, {transform_indices = @transform_5, window_bounds = array<i64: 16, 128>}]} {
    %c0 = arith.constant 0 : index
    %c0_0 = arith.constant 0 : index
    %0 = vector.load %arg1[%c0, %c0_0] : memref<16x128xbf16, #tpu.memory_space<vmem>>, vector<16x128xbf16>
    %c0_1 = arith.constant 0 : index
    %c0_2 = arith.constant 0 : index
    %1 = vector.load %arg2[%c0_1, %c0_2] : memref<128x128xbf16, #tpu.memory_space<vmem>>, vector<128x128xbf16>
    %cst = arith.constant dense<0.000000e+00> : vector<16x128xf32>
    %2 = tpu.matmul %0, %1, %cst {dimension_numbers = #tpu.dot_dimension_numbers<[1], [0], [0], [1], [0, 0, 1, 1], [], []>} : vector<16x128xbf16>, vector<128x128xbf16>, vector<16x128xf32> -> vector<16x128xf32>
    %c0_3 = arith.constant 0 : index
    %c0_4 = arith.constant 0 : index
    %3 = vector.load %arg3[%c0_3, %c0_4] : memref<1x128xf32, #tpu.memory_space<vmem>>, vector<1x128xf32>
    %4 = vector.broadcast %3 : vector<1x128xf32> to vector<16x128xf32>
    %5 = arith.addf %2, %4 : vector<16x128xf32>
    %cst_5 = arith.constant 1.000000e-01 : f32
    %6 = vector.broadcast %cst_5 : f32 to vector<16x128xf32>
    %7 = arith.mulf %6, %5 : vector<16x128xf32>
    %8 = arith.maximumf %5, %7 : vector<16x128xf32>
    %9 = arith.truncf %8 : vector<16x128xf32> to vector<16x128xbf16>
    %c0_6 = arith.constant 0 : index
    %c0_7 = arith.constant 0 : index
    %10 = vector.load %arg4[%c0_6, %c0_7] : memref<128x128xbf16, #tpu.memory_space<vmem>>, vector<128x128xbf16>
    %cst_8 = arith.constant dense<0.000000e+00> : vector<16x128xf32>
    %11 = tpu.matmul %9, %10, %cst_8 {dimension_numbers = #tpu.dot_dimension_numbers<[1], [0], [0], [1], [0, 0, 1, 1], [], []>} : vector<16x128xbf16>, vector<128x128xbf16>, vector<16x128xf32> -> vector<16x128xf32>
    %c0_9 = arith.constant 0 : index
    %c0_10 = arith.constant 0 : index
    %12 = vector.load %arg5[%c0_9, %c0_10] : memref<1x128xf32, #tpu.memory_space<vmem>>, vector<1x128xf32>
    %13 = vector.broadcast %12 : vector<1x128xf32> to vector<16x128xf32>
    %14 = arith.addf %11, %13 : vector<16x128xf32>
    %c0_11 = arith.constant 0 : index
    %c0_12 = arith.constant 0 : index
    %15 = vector.load %arg6[%c0_11, %c0_12] : memref<16x128xf32, #tpu.memory_space<vmem>>, vector<16x128xf32>
    tpu.vector_store %arg6[%c0_11, %c0_12], %14 {strides = array<i32>} : memref<16x128xf32, #tpu.memory_space<vmem>>, vector<16x128xf32>,
    return
  }
  func.func @transform_0(%arg0: i32) -> (i32, i32) {
    %c0_i32 = arith.constant 0 : i32
    %c0_i32_0 = arith.constant 0 : i32
    return %arg0, %c0_i32 : i32, i32
  }
  func.func @transform_1(%arg0: i32) -> (i32, i32) {
    %c0_i32 = arith.constant 0 : i32
    %c0_i32_0 = arith.constant 0 : i32
    %c0_i32_1 = arith.constant 0 : i32
    return %c0_i32, %c0_i32_0 : i32, i32
  }
  func.func @transform_2(%arg0: i32) -> (i32, i32) {
    %c0_i32 = arith.constant 0 : i32
    %c0_i32_0 = arith.constant 0 : i32
    %c0_i32_1 = arith.constant 0 : i32
    return %c0_i32, %c0_i32_0 : i32, i32
  }
  func.func @transform_3(%arg0: i32) -> (i32, i32) {
    %c0_i32 = arith.constant 0 : i32
    %c0_i32_0 = arith.constant 0 : i32
    %c0_i32_1 = arith.constant 0 : i32
    return %c0_i32, %c0_i32_0 : i32, i32
  }
  func.func @transform_4(%arg0: i32) -> (i32, i32) {
    %c0_i32 = arith.constant 0 : i32
    %c0_i32_0 = arith.constant 0 : i32
    %c0_i32_1 = arith.constant 0 : i32
    return %c0_i32, %c0_i32_0 : i32, i32
  }
  func.func @transform_5(%arg0: i32) -> (i32, i32) {
    %c0_i32 = arith.constant 0 : i32
    %c0_i32_0 = arith.constant 0 : i32
    return %arg0, %c0_i32 : i32, i32
  }
}

module attributes {stable_mosaic.version = 11 : i64} {
  func.func @classblock_kernel(%arg0: i32, %arg1: memref<16x128xbf16, #tpu.memory_space<vmem>>, %arg2: memref<128x128xbf16, #tpu.memory_space<vmem>>, %arg3: memref<1x128xf32, #tpu.memory_space<vmem>>, %arg4: memref<128x128xbf16, #tpu.memory_space<vmem>>, %arg5: memref<1x128xf32, #tpu.memory_space<vmem>>, %arg6: memref<16x128xf32, #tpu.memory_space<vmem>>) attributes {dimension_semantics = [#tpu.dimension_semantics<parallel>], iteration_bounds = array<i64: 1>, scalar_prefetch = 0 : i64, scratch_operands = 0 : i64, tpu.core_type = #tpu.core_type<tc>, window_params = [{transform_indices = @transform_0, window_bounds = array<i64: 16, 128>}, {pipeline_mode = #tpu.pipeline_mode<synchronous>, transform_indices = @transform_1, window_bounds = array<i64: 128, 128>}, {pipeline_mode = #tpu.pipeline_mode<synchronous>, transform_indices = @transform_2, window_bounds = array<i64: 1, 128>}, {pipeline_mode = #tpu.pipeline_mode<synchronous>, transform_indices = @transform_3, window_bounds = array<i64: 128, 128>}, {pipeline_mode = #tpu.pipeline_mode<synchronous>, transform_indices = @transform_4, window_bounds = array<i64: 1, 128>}, {transform_indices = @transform_5, window_bounds = array<i64: 16, 128>}]} {
    %c0 = arith.constant 0 : index
    %c0_0 = arith.constant 0 : index
    %0 = vector.load %arg1[%c0, %c0_0] : memref<16x128xbf16, #tpu.memory_space<vmem>>, vector<16x128xbf16>
    %c0_1 = arith.constant 0 : index
    %c0_2 = arith.constant 0 : index
    %1 = vector.load %arg2[%c0_1, %c0_2] : memref<128x128xbf16, #tpu.memory_space<vmem>>, vector<128x128xbf16>
    %cst = arith.constant dense<0.000000e+00> : vector<16x128xf32>
    %2 = tpu.matmul %0, %1, %cst {dimension_numbers = #tpu.dot_dimension_numbers<[1], [0], [0], [1], [0, 0, 1, 1], [], []>} : vector<16x128xbf16>, vector<128x128xbf16>, vector<16x128xf32> -> vector<16x128xf32>
    %c0_3 = arith.constant 0 : index
    %c0_4 = arith.constant 0 : index
    %3 = vector.load %arg3[%c0_3, %c0_4] : memref<1x128xf32, #tpu.memory_space<vmem>>, vector<1x128xf32>
    %4 = vector.broadcast %3 : vector<1x128xf32> to vector<16x128xf32>
    %5 = arith.addf %2, %4 : vector<16x128xf32>
    %cst_5 = arith.constant 1.000000e-01 : f32
    %6 = vector.broadcast %cst_5 : f32 to vector<16x128xf32>
    %7 = arith.mulf %6, %5 : vector<16x128xf32>
    %8 = arith.maximumf %5, %7 : vector<16x128xf32>
    %9 = arith.truncf %8 : vector<16x128xf32> to vector<16x128xbf16>
    %c0_6 = arith.constant 0 : index
    %c0_7 = arith.constant 0 : index
    %10 = vector.load %arg4[%c0_6, %c0_7] : memref<128x128xbf16, #tpu.memory_space<vmem>>, vector<128x128xbf16>
    %cst_8 = arith.constant dense<0.000000e+00> : vector<16x128xf32>
    %11 = tpu.matmul %9, %10, %cst_8 {dimension_numbers = #tpu.dot_dimension_numbers<[1], [0], [0], [1], [0, 0, 1, 1], [], []>} : vector<16x128xbf16>, vector<128x128xbf16>, vector<16x128xf32> -> vector<16x128xf32>
    %c0_9 = arith.constant 0 : index
    %c0_10 = arith.constant 0 : index
    %12 = vector.load %arg5[%c0_9, %c0_10] : memref<1x128xf32, #tpu.memory_space<vmem>>, vector<1x128xf32>
    %13 = vector.broadcast %12 : vector<1x128xf32> to vector<16x128xf32>
    %14 = arith.addf %11, %13 : vector<16x128xf32>
    %c0_11 = arith.constant 0 : index
    %c0_12 = arith.constant 0 : index
    %15 = vector.load %arg6[%c0_11, %c0_12] : memref<16x128xf32, #tpu.memory_space<vmem>>, vector<16x128xf32>
    tpu.vector_store %arg6[%c0_11, %c0_12], %14 {strides = array<i32>} : memref<16x128xf32, #tpu.memory_space<vmem>>, vector<16x128xf32>,
    return
  }
  func.func @transform_0(%arg0: i32) -> (i32, i32) {
    %c0_i32 = arith.constant 0 : i32
    %c0_i32_0 = arith.constant 0 : i32
    return %arg0, %c0_i32 : i32, i32
  }
  func.func @transform_1(%arg0: i32) -> (i32, i32) {
    %c0_i32 = arith.constant 0 : i32
    %c0_i32_0 = arith.constant 0 : i32
    %c0_i32_1 = arith.constant 0 : i32
    return %c0_i32, %c0_i32_0 : i32, i32
  }
  func.func @transform_2(%arg0: i32) -> (i32, i32) {
    %c0_i32 = arith.constant 0 : i32
    %c0_i32_0 = arith.constant 0 : i32
    %c0_i32_1 = arith.constant 0 : i32
    return %c0_i32, %c0_i32_0 : i32, i32
  }
  func.func @transform_3(%arg0: i32) -> (i32, i32) {
    %c0_i32 = arith.constant 0 : i32
    %c0_i32_0 = arith.constant 0 : i32
    %c0_i32_1 = arith.constant 0 : i32
    return %c0_i32, %c0_i32_0 : i32, i32
  }
  func.func @transform_4(%arg0: i32) -> (i32, i32) {
    %c0_i32 = arith.constant 0 : i32
    %c0_i32_0 = arith.constant 0 : i32
    %c0_i32_1 = arith.constant 0 : i32
    return %c0_i32, %c0_i32_0 : i32, i32
  }
  func.func @transform_5(%arg0: i32) -> (i32, i32) {
    %c0_i32 = arith.constant 0 : i32
    %c0_i32_0 = arith.constant 0 : i32
    return %arg0, %c0_i32 : i32, i32
  }
}

</mosaic_0001>

<bundles_post_ra>
// kernel: tpu_custom_call.1
= control target key start
LH: loop header
LB: loop body
LE: loop exit
PB: predicated region body
PF: predicated region fallthrough
CT: control target
= control target key end

     0   :  { %10 = vsyncpa [#allocation3], 0  ;;  %s568_s0 = inlined_call_operand.hbm [shape: bf16[16,128], index: 0, kind: input, shape index: {}]   ;;  %s569_s1 = inlined_call_operand.hbm [shape: bf16[128,128], index: 1, kind: input, shape index: {}]   ;;  %s570_s2 = inlined_call_operand.vmem [shape: f32[1,128], index: 2, kind: input, shape index: {}]   ;;  %s571_s3 = inlined_call_operand.hbm [shape: bf16[128,128], index: 3, kind: input, shape index: {}]   ;;  %s572_s4 = inlined_call_operand.vmem [shape: f32[1,128], index: 4, kind: input, shape index: {}]   ;;  %s573_s5 = inlined_call_operand.hbm [shape: f32[16,128], index: 5, kind: output, shape index: {}]  }
   0x1   :  { %11 = vsyncpa [#allocation6], 0 }
   0x2   :  { %12 = vsyncpa [#allocation4], 0  ;;  %s510_s18 = smov [#allocation5]   ;;  %s511_s20 = smov [#allocation2]  }
   0x3   :  { %s30_s19 = sshll.u32 %s510_s18, 4  ;;  %s18_s21 = sshll.u32 %s511_s20, 4  ;;  %s31_s19 = int_to_ptr.vmem [resolvable:$true] %s30_s19  ;;  %s19_s21 = int_to_ptr.vmem [resolvable:$true] %s18_s21 }
   0x4   :  { %s432_s22 = scalar_lea.vmem %s31_s19, 1024  ;;  %p437_p1 = scmp.lt.s32.totalorder %s31_s19, %s31_s19 }
   0x5   :  { %p433_p0 = scmp.ne.s32.totalorder %s31_s19, %s432_s22  ;;  %p438_p2 = scmp.lt.s32.totalorder %s432_s22, %s432_s22 }
   0x7   :  { %p439_p3 = por %p438_p2, %p437_p1 }
   0x9   :  { %p440_p4 = pnand %p439_p3, %p433_p0 }
   0xb   :  { %443 = shalt.err (!%p440_p4)
}
   0xc   :  { %s512_s23 = smov 64   ;;  %s513_s24 = smov 4  }
   0xd   :  { %36 = dma.hbm_to_vmem [thread:$0]  %s569_s1, 1024, %s31_s19, [#allocation6], %s512_s23, %s512_s23, %s513_s24  }
   0xe   :  { %s452_s27 = scalar_lea.vmem %s19_s21, 128  ;;  %p457_p6 = scmp.lt.s32.totalorder %s19_s21, %s19_s21 }
   0xf   :  { %p453_p5 = scmp.ne.s32.totalorder %s19_s21, %s452_s27  ;;  %p458_p7 = scmp.lt.s32.totalorder %s452_s27, %s452_s27 }
  0x11   :  { %p459_p8 = por %p458_p7, %p457_p6 }
  0x13   :  { %p460_p9 = pnand %p459_p8, %p453_p5 }
  0x15   :  { %463 = shalt.err (!%p460_p9)
}
  0x16   :  { %24 = dma.hbm_to_vmem [thread:$0]  %s568_s0, 128, %s19_s21, [#allocation3], %s512_s23, %s512_s23, %s513_s24  }
  0x17   :  { %s514_s30 = smov [#allocation7]  }
  0x18   :  { %s44_s6 = sshll.u32 %s514_s30, 4  ;;  %s45_s6 = int_to_ptr.vmem [resolvable:$true] %s44_s6 }
  0x19   :  { %s472_s7 = scalar_lea.vmem %s45_s6, 1024  ;;  %p477_p11 = scmp.lt.s32.totalorder %s45_s6, %s45_s6 }
  0x1a   :  { %p473_p10 = scmp.ne.s32.totalorder %s45_s6, %s472_s7  ;;  %p478_p12 = scmp.lt.s32.totalorder %s472_s7, %s472_s7 }
  0x1c   :  { %p479_p13 = por %p478_p12, %p477_p11 }
  0x1e   :  { %p480_p0 = pnand %p479_p13, %p473_p10 }
  0x20   :  { %483 = shalt.err (!%p480_p0)
}
  0x21   :  { %50 = dma.hbm_to_vmem [thread:$0]  %s571_s3, 1024, %s45_s6, [#allocation6], %s512_s23, %s512_s23, %s513_s24  }
  0x22   :  { %504 = dma.done.wait [#allocation3], 128  }
  0x23   :  { %505 = vsyncadd [#allocation3], 4294967168 }
  0x24   :  { %506 = dma.done.wait [#allocation6], 2048  }
  0x25   :  { %507 = vsyncadd [#allocation6], 4294965248  ;;  %v515_v0 = vmov 0.0   ;;  %vm516_vm0 = vmmov 0   ;;  %v407_v1 = vld [vmem:[#allocation5 + $0x38] sm:$0xff]   ;;  %v408_v2 = vld [vmem:[#allocation5 + $0x30] sm:$0xff]  }
  0x26   :  { %357 = vmatprep.subr.bf16.mxu0 %v515_v0  ;;  %373 = vmatprep.mubr.msk.bf16.mxu0 %vm516_vm0, %v515_v0  ;;  %v409_v3 = vld [vmem:[#allocation5 + $0x28] sm:$0xff]   ;;  %v416_v4 = vld [vmem:[#allocation7 + $0x38] sm:$0xff]   ;;  %v410_v5 = vld [vmem:[#allocation5 + $0x20] sm:$0xff]   ;;  %s517_s11 = smov [#allocation8]  }
  0x27   :  { %377 = vmatprep.subr.bf16.mxu1 %v515_v0  ;;  %393 = vmatprep.mubr.msk.bf16.mxu1 %vm516_vm0, %v515_v0  ;;  %v417_v6 = vld [vmem:[#allocation7 + $0x30] sm:$0xff]   ;;  %v411_v7 = vld [vmem:[#allocation5 + $0x18] sm:$0xff]   ;;  %v418_v8 = vld [vmem:[#allocation7 + $0x28] sm:$0xff]  }
  0x28   :  { %358 = vmatpush3.bf16.msra.mxu0 %v407_v1  ;;  %378 = vmatpush3.bf16.msra.mxu1 %v416_v4  ;;  %v412_v9 = vld [vmem:[#allocation5 + $0x10] sm:$0xff]   ;;  %v419_v10 = vld [vmem:[#allocation7 + $0x20] sm:$0xff]   ;;  %v413_v11 = vld [vmem:[#allocation5 + $0x8] sm:$0xff]  }
  0x29   :  { %359 = vmatprep.subr.bf16.mxu0 %v515_v0  ;;  %379 = vmatprep.subr.bf16.mxu1 %v515_v0  ;;  %v420_v12 = vld [vmem:[#allocation7 + $0x18] sm:$0xff]   ;;  %v414_v13 = vld [vmem:[#allocation5] sm:$0xff]   ;;  %v421_v15 = vld [vmem:[#allocation7 + $0x10] sm:$0xff]  }
  0x2a   :  { %v415_v14 = vld [vmem:[#allocation2] sm:$0xff]   ;;  %v422_v16 = vld [vmem:[#allocation7 + $0x8] sm:$0xff]   ;;  %v423_v17 = vld [vmem:[#allocation7] sm:$0xff]  }
  0x2b   :  { %v320_v18 = vld [vmem:[%s570_s2] ss:$0 sm:$0xff]  ;;  %s307_s2 = sshll.u32 %s517_s11, 4  ;;  %s308_s2 = int_to_ptr.vmem [resolvable:$true] %s307_s2 }
  0x2c   :  { %360 = vmatpush3.bf16.msra.mxu0 %v408_v2  ;;  %380 = vmatpush3.bf16.msra.mxu1 %v417_v6  ;;  %v330_v30 = vld [vmem:[%s572_s4] ss:$0 sm:$0xff]  ;;  %s484_s12 = scalar_lea.vmem %s308_s2, 256  ;;  %p489_p2 = scmp.lt.s32.totalorder %s308_s2, %s308_s2 }
  0x2d   :  { %361 = vmatprep.subr.bf16.mxu0 %v515_v0  ;;  %381 = vmatprep.subr.bf16.mxu1 %v515_v0  ;;  %p485_p1 = scmp.ne.s32.totalorder %s308_s2, %s484_s12  ;;  %p490_p3 = scmp.lt.s32.totalorder %s484_s12, %s484_s12 }
  0x2f   :  { %p491_p4 = por %p490_p3, %p489_p2 }
  0x30   :  { %362 = vmatpush3.bf16.msra.mxu0 %v409_v3  ;;  %382 = vmatpush3.bf16.msra.mxu1 %v418_v8 }
  0x31   :  { %363 = vmatprep.subr.bf16.mxu0 %v515_v0  ;;  %383 = vmatprep.subr.bf16.mxu1 %v515_v0  ;;  %p492_p5 = pnand %p491_p4, %p485_p1 }
  0x34   :  { %364 = vmatpush3.bf16.msra.mxu0 %v410_v5  ;;  %384 = vmatpush3.bf16.msra.mxu1 %v419_v10 }
  0x35   :  { %365 = vmatprep.subr.bf16.mxu0 %v515_v0  ;;  %385 = vmatprep.subr.bf16.mxu1 %v515_v0 }
  0x38   :  { %366 = vmatpush3.bf16.msra.mxu0 %v411_v7  ;;  %386 = vmatpush3.bf16.msra.mxu1 %v420_v12 }
  0x39   :  { %367 = vmatprep.subr.bf16.mxu0 %v515_v0  ;;  %387 = vmatprep.subr.bf16.mxu1 %v515_v0 }
  0x3c   :  { %368 = vmatpush3.bf16.msra.mxu0 %v412_v9  ;;  %388 = vmatpush3.bf16.msra.mxu1 %v421_v15 }
  0x3d   :  { %369 = vmatprep.subr.bf16.mxu0 %v515_v0  ;;  %389 = vmatprep.subr.bf16.mxu1 %v515_v0 }
  0x40   :  { %370 = vmatpush3.bf16.msra.mxu0 %v413_v11  ;;  %390 = vmatpush3.bf16.msra.mxu1 %v422_v16 }
  0x41   :  { %371 = vmatprep.subr.bf16.mxu0 %v515_v0  ;;  %391 = vmatprep.subr.bf16.mxu1 %v515_v0 }
  0x44   :  { %372 = vmatpush3.bf16.msra.mxu0 %v414_v13  ;;  %392 = vmatpush3.bf16.msra.mxu1 %v423_v17 }
  0x47   :  { %374 = vmatmul.mubr.bf16.vlgmr.msra.gmra.mxu0 %v415_v14 }
 0x107   :  { %v176_v19 = vpop.f32.mrf.mxu0 }
 0x108   :  { %v177_v20 = vadd.f32 %v320_v18, %v176_v19 }
 0x109   :  { %v375_v21 = vpop.f32.mrf.mxu0 }
 0x10a   :  { %v183_v23 = vmul.f32 0.1, %v177_v20 }
 0x10b   :  { %v179_v22 = vpop.f32.mrf.mxu0 }
 0x10c   :  { %v180_v24 = vadd.f32 %v320_v18, %v179_v22  ;;  %v185_v27 = vmax.f32 %v177_v20, %v183_v23 }
 0x10d   :  { %v376_v25 = vpop.f32.mrf.mxu0 }
 0x10e   :  { %v184_v26 = vmul.f32 0.1, %v180_v24 }
 0x110   :  { %v186_v28 = vmax.f32 %v180_v24, %v184_v26 }
 0x112   :  { %v187_v29 = vpack.c.bf16 %v186_v28, %v185_v27 }
 0x114   :  { %394 = vmatmul.mubr.bf16.vlgmr.msra.gmra.mxu1 %v187_v29 }
 0x1d4   :  { %v293_v31 = vpop.f32.mrf.mxu1 }
 0x1d5   :  { %v294_v32 = vadd.f32 %v330_v30, %v293_v31 }
 0x1d6   :  { %v395_v33 = vpop.f32.mrf.mxu1 }
 0x1d7   :  { %300 = vst [vmem:[#allocation8] sm:$0xff] %v294_v32 }
 0x1d8   :  { %v296_v34 = vpop.f32.mrf.mxu1 }
 0x1d9   :  { %v297_v35 = vadd.f32 %v330_v30, %v296_v34 }
 0x1da   :  { %v396_v36 = vpop.f32.mrf.mxu1 }
 0x1db   :  { %301 = vst [vmem:[#allocation8 + $0x8] sm:$0xff] %v297_v35 }
 0x1dc   :  { %495 = shalt.err (!%p492_p5)
}
 0x1dd   :  { %s518_s13 = smov 128   ;;  %s519_s4 = smov 8  }
 0x1de   :  { %313 = dma.vmem_to_hbm [thread:$0]  %s308_s2, 256, %s573_s5, [#allocation4], %s518_s13, %s518_s13, %s519_s4  }
 0x1df   :  { %508 = dma.done.wait [#allocation4], 256  }
 0x1e0   :  { %509 = vsyncadd [#allocation4], 4294967040 }
 0x1e1   :  { %317 = vsyncpa [#allocation3], 1 }
 0x1e2   :  { %318 = vsyncpa [#allocation6], 1 }
 0x1e3   :  { %319 = vsyncpa [#allocation4], 1 }

// kernel: tpu_custom_call.1
= control target key start
LH: loop header
LB: loop body
LE: loop exit
PB: predicated region body
PF: predicated region fallthrough
CT: control target
= control target key end

     0   :  { %10 = vsyncpa [#allocation3], 0  ;;  %s568_s0 = inlined_call_operand.hbm [shape: bf16[16,128], index: 0, kind: input, shape index: {}]   ;;  %s569_s1 = inlined_call_operand.hbm [shape: bf16[128,128], index: 1, kind: input, shape index: {}]   ;;  %s570_s2 = inlined_call_operand.vmem [shape: f32[1,128], index: 2, kind: input, shape index: {}]   ;;  %s571_s3 = inlined_call_operand.hbm [shape: bf16[128,128], index: 3, kind: input, shape index: {}]   ;;  %s572_s4 = inlined_call_operand.vmem [shape: f32[1,128], index: 4, kind: input, shape index: {}]   ;;  %s573_s5 = inlined_call_operand.hbm [shape: f32[16,128], index: 5, kind: output, shape index: {}]  }
   0x1   :  { %11 = vsyncpa [#allocation6], 0 }
   0x2   :  { %12 = vsyncpa [#allocation4], 0  ;;  %s510_s18 = smov [#allocation5]   ;;  %s511_s20 = smov [#allocation2]  }
   0x3   :  { %s30_s19 = sshll.u32 %s510_s18, 4  ;;  %s18_s21 = sshll.u32 %s511_s20, 4  ;;  %s31_s19 = int_to_ptr.vmem [resolvable:$true] %s30_s19  ;;  %s19_s21 = int_to_ptr.vmem [resolvable:$true] %s18_s21 }
   0x4   :  { %s432_s22 = scalar_lea.vmem %s31_s19, 1024  ;;  %p437_p1 = scmp.lt.s32.totalorder %s31_s19, %s31_s19 }
   0x5   :  { %p433_p0 = scmp.ne.s32.totalorder %s31_s19, %s432_s22  ;;  %p438_p2 = scmp.lt.s32.totalorder %s432_s22, %s432_s22 }
   0x7   :  { %p439_p3 = por %p438_p2, %p437_p1 }
   0x9   :  { %p440_p4 = pnand %p439_p3, %p433_p0 }
   0xb   :  { %443 = shalt.err (!%p440_p4)
}
   0xc   :  { %s512_s23 = smov 64   ;;  %s513_s24 = smov 4  }
   0xd   :  { %36 = dma.hbm_to_vmem [thread:$0]  %s569_s1, 1024, %s31_s19, [#allocation6], %s512_s23, %s512_s23, %s513_s24  }
   0xe   :  { %s452_s27 = scalar_lea.vmem %s19_s21, 128  ;;  %p457_p6 = scmp.lt.s32.totalorder %s19_s21, %s19_s21 }
   0xf   :  { %p453_p5 = scmp.ne.s32.totalorder %s19_s21, %s452_s27  ;;  %p458_p7 = scmp.lt.s32.totalorder %s452_s27, %s452_s27 }
  0x11   :  { %p459_p8 = por %p458_p7, %p457_p6 }
  0x13   :  { %p460_p9 = pnand %p459_p8, %p453_p5 }
  0x15   :  { %463 = shalt.err (!%p460_p9)
}
  0x16   :  { %24 = dma.hbm_to_vmem [thread:$0]  %s568_s0, 128, %s19_s21, [#allocation3], %s512_s23, %s512_s23, %s513_s24  }
  0x17   :  { %s514_s30 = smov [#allocation7]  }
  0x18   :  { %s44_s6 = sshll.u32 %s514_s30, 4  ;;  %s45_s6 = int_to_ptr.vmem [resolvable:$true] %s44_s6 }
  0x19   :  { %s472_s7 = scalar_lea.vmem %s45_s6, 1024  ;;  %p477_p11 = scmp.lt.s32.totalorder %s45_s6, %s45_s6 }
  0x1a   :  { %p473_p10 = scmp.ne.s32.totalorder %s45_s6, %s472_s7  ;;  %p478_p12 = scmp.lt.s32.totalorder %s472_s7, %s472_s7 }
  0x1c   :  { %p479_p13 = por %p478_p12, %p477_p11 }
  0x1e   :  { %p480_p0 = pnand %p479_p13, %p473_p10 }
  0x20   :  { %483 = shalt.err (!%p480_p0)
}
  0x21   :  { %50 = dma.hbm_to_vmem [thread:$0]  %s571_s3, 1024, %s45_s6, [#allocation6], %s512_s23, %s512_s23, %s513_s24  }
  0x22   :  { %504 = dma.done.wait [#allocation3], 128  }
  0x23   :  { %505 = vsyncadd [#allocation3], 4294967168 }
  0x24   :  { %506 = dma.done.wait [#allocation6], 2048  }
  0x25   :  { %507 = vsyncadd [#allocation6], 4294965248  ;;  %v515_v0 = vmov 0.0   ;;  %vm516_vm0 = vmmov 0   ;;  %v407_v1 = vld [vmem:[#allocation5 + $0x38] sm:$0xff]   ;;  %v408_v2 = vld [vmem:[#allocation5 + $0x30] sm:$0xff]  }
  0x26   :  { %357 = vmatprep.subr.bf16.mxu0 %v515_v0  ;;  %373 = vmatprep.mubr.msk.bf16.mxu0 %vm516_vm0, %v515_v0  ;;  %v409_v3 = vld [vmem:[#allocation5 + $0x28] sm:$0xff]   ;;  %v416_v4 = vld [vmem:[#allocation7 + $0x38] sm:$0xff]   ;;  %v410_v5 = vld [vmem:[#allocation5 + $0x20] sm:$0xff]   ;;  %s517_s11 = smov [#allocation8]  }
  0x27   :  { %377 = vmatprep.subr.bf16.mxu1 %v515_v0  ;;  %393 = vmatprep.mubr.msk.bf16.mxu1 %vm516_vm0, %v515_v0  ;;  %v417_v6 = vld [vmem:[#allocation7 + $0x30] sm:$0xff]   ;;  %v411_v7 = vld [vmem:[#allocation5 + $0x18] sm:$0xff]   ;;  %v418_v8 = vld [vmem:[#allocation7 + $0x28] sm:$0xff]  }
  0x28   :  { %358 = vmatpush3.bf16.msra.mxu0 %v407_v1  ;;  %378 = vmatpush3.bf16.msra.mxu1 %v416_v4  ;;  %v412_v9 = vld [vmem:[#allocation5 + $0x10] sm:$0xff]   ;;  %v419_v10 = vld [vmem:[#allocation7 + $0x20] sm:$0xff]   ;;  %v413_v11 = vld [vmem:[#allocation5 + $0x8] sm:$0xff]  }
  0x29   :  { %359 = vmatprep.subr.bf16.mxu0 %v515_v0  ;;  %379 = vmatprep.subr.bf16.mxu1 %v515_v0  ;;  %v420_v12 = vld [vmem:[#allocation7 + $0x18] sm:$0xff]   ;;  %v414_v13 = vld [vmem:[#allocation5] sm:$0xff]   ;;  %v421_v15 = vld [vmem:[#allocation7 + $0x10] sm:$0xff]  }
  0x2a   :  { %v415_v14 = vld [vmem:[#allocation2] sm:$0xff]   ;;  %v422_v16 = vld [vmem:[#allocation7 + $0x8] sm:$0xff]   ;;  %v423_v17 = vld [vmem:[#allocation7] sm:$0xff]  }
  0x2b   :  { %v320_v18 = vld [vmem:[%s570_s2] ss:$0 sm:$0xff]  ;;  %s307_s2 = sshll.u32 %s517_s11, 4  ;;  %s308_s2 = int_to_ptr.vmem [resolvable:$true] %s307_s2 }
  0x2c   :  { %360 = vmatpush3.bf16.msra.mxu0 %v408_v2  ;;  %380 = vmatpush3.bf16.msra.mxu1 %v417_v6  ;;  %v330_v30 = vld [vmem:[%s572_s4] ss:$0 sm:$0xff]  ;;  %s484_s12 = scalar_lea.vmem %s308_s2, 256  ;;  %p489_p2 = scmp.lt.s32.totalorder %s308_s2, %s308_s2 }
  0x2d   :  { %361 = vmatprep.subr.bf16.mxu0 %v515_v0  ;;  %381 = vmatprep.subr.bf16.mxu1 %v515_v0  ;;  %p485_p1 = scmp.ne.s32.totalorder %s308_s2, %s484_s12  ;;  %p490_p3 = scmp.lt.s32.totalorder %s484_s12, %s484_s12 }
  0x2f   :  { %p491_p4 = por %p490_p3, %p489_p2 }
  0x30   :  { %362 = vmatpush3.bf16.msra.mxu0 %v409_v3  ;;  %382 = vmatpush3.bf16.msra.mxu1 %v418_v8 }
  0x31   :  { %363 = vmatprep.subr.bf16.mxu0 %v515_v0  ;;  %383 = vmatprep.subr.bf16.mxu1 %v515_v0  ;;  %p492_p5 = pnand %p491_p4, %p485_p1 }
  0x34   :  { %364 = vmatpush3.bf16.msra.mxu0 %v410_v5  ;;  %384 = vmatpush3.bf16.msra.mxu1 %v419_v10 }
  0x35   :  { %365 = vmatprep.subr.bf16.mxu0 %v515_v0  ;;  %385 = vmatprep.subr.bf16.mxu1 %v515_v0 }
  0x38   :  { %366 = vmatpush3.bf16.msra.mxu0 %v411_v7  ;;  %386 = vmatpush3.bf16.msra.mxu1 %v420_v12 }
  0x39   :  { %367 = vmatprep.subr.bf16.mxu0 %v515_v0  ;;  %387 = vmatprep.subr.bf16.mxu1 %v515_v0 }
  0x3c   :  { %368 = vmatpush3.bf16.msra.mxu0 %v412_v9  ;;  %388 = vmatpush3.bf16.msra.mxu1 %v421_v15 }
  0x3d   :  { %369 = vmatprep.subr.bf16.mxu0 %v515_v0  ;;  %389 = vmatprep.subr.bf16.mxu1 %v515_v0 }
  0x40   :  { %370 = vmatpush3.bf16.msra.mxu0 %v413_v11  ;;  %390 = vmatpush3.bf16.msra.mxu1 %v422_v16 }
  0x41   :  { %371 = vmatprep.subr.bf16.mxu0 %v515_v0  ;;  %391 = vmatprep.subr.bf16.mxu1 %v515_v0 }
  0x44   :  { %372 = vmatpush3.bf16.msra.mxu0 %v414_v13  ;;  %392 = vmatpush3.bf16.msra.mxu1 %v423_v17 }
  0x47   :  { %374 = vmatmul.mubr.bf16.vlgmr.msra.gmra.mxu0 %v415_v14 }
 0x107   :  { %v176_v19 = vpop.f32.mrf.mxu0 }
 0x108   :  { %v177_v20 = vadd.f32 %v320_v18, %v176_v19 }
 0x109   :  { %v375_v21 = vpop.f32.mrf.mxu0 }
 0x10a   :  { %v183_v23 = vmul.f32 0.1, %v177_v20 }
 0x10b   :  { %v179_v22 = vpop.f32.mrf.mxu0 }
 0x10c   :  { %v180_v24 = vadd.f32 %v320_v18, %v179_v22  ;;  %v185_v27 = vmax.f32 %v177_v20, %v183_v23 }
 0x10d   :  { %v376_v25 = vpop.f32.mrf.mxu0 }
 0x10e   :  { %v184_v26 = vmul.f32 0.1, %v180_v24 }
 0x110   :  { %v186_v28 = vmax.f32 %v180_v24, %v184_v26 }
 0x112   :  { %v187_v29 = vpack.c.bf16 %v186_v28, %v185_v27 }
 0x114   :  { %394 = vmatmul.mubr.bf16.vlgmr.msra.gmra.mxu1 %v187_v29 }
 0x1d4   :  { %v293_v31 = vpop.f32.mrf.mxu1 }
 0x1d5   :  { %v294_v32 = vadd.f32 %v330_v30, %v293_v31 }
 0x1d6   :  { %v395_v33 = vpop.f32.mrf.mxu1 }
 0x1d7   :  { %300 = vst [vmem:[#allocation8] sm:$0xff] %v294_v32 }
 0x1d8   :  { %v296_v34 = vpop.f32.mrf.mxu1 }
 0x1d9   :  { %v297_v35 = vadd.f32 %v330_v30, %v296_v34 }
 0x1da   :  { %v396_v36 = vpop.f32.mrf.mxu1 }
 0x1db   :  { %301 = vst [vmem:[#allocation8 + $0x8] sm:$0xff] %v297_v35 }
 0x1dc   :  { %495 = shalt.err (!%p492_p5)
}
 0x1dd   :  { %s518_s13 = smov 128   ;;  %s519_s4 = smov 8  }
 0x1de   :  { %313 = dma.vmem_to_hbm [thread:$0]  %s308_s2, 256, %s573_s5, [#allocation4], %s518_s13, %s518_s13, %s519_s4  }
 0x1df   :  { %508 = dma.done.wait [#allocation4], 256  }
 0x1e0   :  { %509 = vsyncadd [#allocation4], 4294967040 }
 0x1e1   :  { %317 = vsyncpa [#allocation3], 1 }
 0x1e2   :  { %318 = vsyncpa [#allocation6], 1 }
 0x1e3   :  { %319 = vsyncpa [#allocation4], 1 }

</bundles_post_ra>
